<compile_context>
chip_gen: v7x
topology: tpu7x:2x2x1
jax: 0.10.0
libtpu: 0.0.40
codegen_flags: <defaults>
</compile_context>

<pallas_src>
import functools

import jax
import jax.numpy as jnp
from jax.experimental import pallas as pl
from jax.experimental.pallas import tpu as pltpu


def _round_up(x, m):
    return ((x + m - 1) // m) * m


def _cnn_fc_kernel(x_ref, w_ref, b_ref, o_ref, *, min_val, max_val):
    """Fused Linear(F -> 1) + Hardtanh on one batch tile.

    x_ref: (TB, F) VMEM   flattened activations (one batch tile, native dtype)
    w_ref: (F, 1)  VMEM   linear weight column (resident across the grid)
    b_ref: (1, 1)  SMEM   linear bias (f32)
    o_ref: (TB, 1) VMEM   output tile (f32)
    """
    # Single-output Linear as an MXU matvec: (TB, F) @ (F, 1) -> (TB, 1) f32.
    y = jnp.dot(x_ref[...], w_ref[...], preferred_element_type=jnp.float32)
    y = y + b_ref[0, 0]
    # Hardtanh(min_val, max_val)
    o_ref[...] = jnp.clip(y, min_val, max_val).astype(o_ref.dtype)


def cnn_forward(x_nchw, weight, bias, *, min_val=-1.0, max_val=1.0,
                block_b=2048, x_vmem_budget_bytes=20 << 20):
    """JAX wrapper reproducing CNN.forward.

    x_nchw : (B, C, H, W)   activations (f32 or bf16; kept in native dtype)
    weight : (1, C*H*W)     (same layout as nn.Linear.weight)
    bias   : (1,)           (same as nn.Linear.bias)
    returns: (B, 1) float32
    """
    B, C, H, W = x_nchw.shape
    F = C * H * W
    x_flat = x_nchw.reshape(B, F)               # == torch .view(-1, C*H*W)
    itemsize = jnp.dtype(x_flat.dtype).itemsize

    # Batch tile: multiple of 8, as large as sensible (amortize per-step cost).
    TB = min(int(block_b), _round_up(B, 8))
    # Keep >= 2 grid steps once the batch is big enough so v7x's two
    # TensorCores can both take work on the "parallel" batch axis.
    if B >= 1024:
        TB = min(TB, _round_up(pl.cdiv(B, 2), 8))
    # Keep 2 double-buffered (TB, F) x tiles inside the VMEM budget.
    max_tb = max(8, (x_vmem_budget_bytes // (2 * F * itemsize)) // 8 * 8)
    TB = min(TB, max_tb)

    num_tiles = pl.cdiv(B, TB)                  # ragged last tile is fine

    # Tiny weight column / bias; weight matches x's dtype (bf16 stays bf16).
    w_col = weight.reshape(F, 1).astype(x_flat.dtype)
    b_2d = bias.reshape(1, 1).astype(jnp.float32)

    kernel = functools.partial(
        _cnn_fc_kernel, min_val=float(min_val), max_val=float(max_val)
    )

    out = pl.pallas_call(
        kernel,
        grid=(num_tiles,),
        in_specs=[
            # Full-F block (exempt from 128-divisibility since it equals the
            # array dim) => no feature padding, no extra HBM traffic.
            pl.BlockSpec((TB, F), lambda i: (i, 0)),            # x tile
            pl.BlockSpec((F, 1), lambda i: (0, 0)),             # weight (resident)
            pl.BlockSpec(memory_space=pltpu.MemorySpace.SMEM),  # bias scalar
        ],
        out_specs=pl.BlockSpec((TB, 1), lambda i: (i, 0)),
        out_shape=jax.ShapeDtypeStruct((B, 1), jnp.float32),
        compiler_params=pltpu.CompilerParams(
            dimension_semantics=("parallel",),   # megacore sharding on v7x
            vmem_limit_bytes=32 << 20,           # explicit: > v5e's 16 MiB default,
                                                 # < v7x's 64 MiB physical
        ),
        cost_estimate=pl.CostEstimate(
            flops=2 * B * F,
            transcendentals=0,
            bytes_accessed=B * F * itemsize + F * itemsize + B * 4,
        ),
    )(x_flat, w_col, b_2d)

    return out


if __name__ == "__main__":
    # Module defaults: in_channel=1, height=3, width=100  ->  F = 300.
    batch, in_channel, height, width = 2, 1, 3, 100
    F = in_channel * height * width
    min_val, max_val = -1.0, 1.0

    key = jax.random.PRNGKey(0)
    kx, kw, kb = jax.random.split(key, 3)

    # Deterministic parameter init (PyTorch Linear-style uniform bound).
    bound = 1.0 / (F ** 0.5)
    x = jax.random.normal(kx, (batch, in_channel, height, width), dtype=jnp.float32)
    weight = jax.random.uniform(kw, (1, F), minval=-bound, maxval=bound,
                                dtype=jnp.float32)
    bias = jax.random.uniform(kb, (1,), minval=-bound, maxval=bound,
                              dtype=jnp.float32)

    out = cnn_forward(x, weight, bias, min_val=min_val, max_val=max_val)
    out = jax.block_until_ready(out)

    # Pure-JAX reference check (flatten -> linear -> hardtanh).
    ref = jnp.clip(x.reshape(batch, F) @ weight.T + bias, min_val, max_val)
    assert out.shape == (batch, 1), out.shape
    assert jnp.allclose(out, ref, atol=1e-5, rtol=1e-5), (out, ref)

    print("KERNEL_OK")
</pallas_src>

<mosaic_0001>
module attributes {stable_mosaic.version = 11 : i64} {
  func.func @_cnn_fc_kernel(%arg0: i32, %arg1: memref<8x300xf32, #tpu.memory_space<vmem>>, %arg2: memref<300x1xf32, #tpu.memory_space<vmem>>, %arg3: memref<1x1xf32, #tpu.memory_space<smem>>, %arg4: memref<8x1xf32, #tpu.memory_space<vmem>>) attributes {dimension_semantics = [#tpu.dimension_semantics<parallel>], iteration_bounds = array<i64: 1>, scalar_prefetch = 0 : i64, scratch_operands = 0 : i64, tpu.core_type = #tpu.core_type<tc>, window_params = [{transform_indices = @transform_0, window_bounds = array<i64: 8, 300>}, {pipeline_mode = #tpu.pipeline_mode<synchronous>, transform_indices = @transform_1, window_bounds = array<i64: 300, 1>}, {transform_indices = @transform_2, window_bounds = array<i64: 1, 1>}, {transform_indices = @transform_3, window_bounds = array<i64: 8, 1>}]} {
    %c0 = arith.constant 0 : index
    %c0_0 = arith.constant 0 : index
    %0 = vector.load %arg1[%c0, %c0_0] : memref<8x300xf32, #tpu.memory_space<vmem>>, vector<8x300xf32>
    %c0_1 = arith.constant 0 : index
    %c0_2 = arith.constant 0 : index
    %1 = vector.load %arg2[%c0_1, %c0_2] : memref<300x1xf32, #tpu.memory_space<vmem>>, vector<300x1xf32>
    %cst = arith.constant dense<0.000000e+00> : vector<8x1xf32>
    %2 = tpu.matmul %0, %1, %cst {dimension_numbers = #tpu.dot_dimension_numbers<[1], [0], [0], [1], [0, 0, 1, 1], [], []>} : vector<8x300xf32>, vector<300x1xf32>, vector<8x1xf32> -> vector<8x1xf32>
    %c0_3 = arith.constant 0 : index
    %c0_4 = arith.constant 0 : index
    %3 = memref.load %arg3[%c0_3, %c0_4] : memref<1x1xf32, #tpu.memory_space<smem>>
    %4 = vector.broadcast %3 : f32 to vector<8x1xf32>
    %5 = arith.addf %2, %4 : vector<8x1xf32>
    %cst_5 = arith.constant -1.000000e+00 : f32
    %cst_6 = arith.constant 1.000000e+00 : f32
    %6 = vector.broadcast %cst_5 : f32 to vector<8x1xf32>
    %7 = arith.maximumf %6, %5 : vector<8x1xf32>
    %8 = vector.broadcast %cst_6 : f32 to vector<8x1xf32>
    %9 = arith.minimumf %8, %7 : vector<8x1xf32>
    %c0_7 = arith.constant 0 : index
    %c0_8 = arith.constant 0 : index
    %10 = vector.load %arg4[%c0_7, %c0_8] : memref<8x1xf32, #tpu.memory_space<vmem>>, vector<8x1xf32>
    tpu.vector_store %arg4[%c0_7, %c0_8], %9 {strides = array<i32>} : memref<8x1xf32, #tpu.memory_space<vmem>>, vector<8x1xf32>,
    return
  }
  func.func @transform_0(%arg0: i32) -> (i32, i32) {
    %c0_i32 = arith.constant 0 : i32
    %c0_i32_0 = arith.constant 0 : i32
    return %arg0, %c0_i32 : i32, i32
  }
  func.func @transform_1(%arg0: i32) -> (i32, i32) {
    %c0_i32 = arith.constant 0 : i32
    %c0_i32_0 = arith.constant 0 : i32
    %c0_i32_1 = arith.constant 0 : i32
    return %c0_i32, %c0_i32_0 : i32, i32
  }
  func.func @transform_2(%arg0: i32) -> (i32, i32) {
    %c0_i32 = arith.constant 0 : i32
    %c0_i32_0 = arith.constant 0 : i32
    %c0_i32_1 = arith.constant 0 : i32
    return %c0_i32, %c0_i32_0 : i32, i32
  }
  func.func @transform_3(%arg0: i32) -> (i32, i32) {
    %c0_i32 = arith.constant 0 : i32
    %c0_i32_0 = arith.constant 0 : i32
    return %arg0, %c0_i32 : i32, i32
  }
}

</mosaic_0001>

<bundles_post_ra>
// kernel: tpu_custom_call.1
= control target key start
LH: loop header
LB: loop body
LE: loop exit
PB: predicated region body
PF: predicated region fallthrough
CT: control target
= control target key end

     0   :  { %v403_v7 = vmov 0.0|0.0   ;;  %v404_v14 = vmov 1983009808   ;;  %v70_v16 = vlaneseq  ;;  %vm405_vm0 = vmmov 0   ;;  %s564_s0 = inlined_call_operand.vmem [shape: f32[2,300], index: 0, kind: input, shape index: {}]   ;;  %s565_s1 = inlined_call_operand.vmem [shape: f32[300,1], index: 1, kind: input, shape index: {}]   ;;  %s566_s2 = inlined_call_operand.<no memory space> [shape: f32[1,1], index: 2, kind: input, shape index: {}]   ;;  %s567_s3 = inlined_call_operand.vmem [shape: f32[2,1], index: 3, kind: output, shape index: {}]  }
   0x1   :  { %v35_v0 = vld [vmem:[%s565_s1 + $0x80] sm:$0xff]  ;;  %v36_v1 = vld [vmem:[%s565_s1 + $0x88] sm:$0xff]  ;;  %v37_v5 = vld [vmem:[%s565_s1 + $0x90] sm:$0xff]  ;;  %382 = vmatprep.subr.bf16.mxu1 %v403_v7  ;;  %v68_v15 = vunpack.c.l.s4 %v404_v14  ;;  %v406_v18 = vmov 0.0   ;;  %vm103_vm1 = vcmask 1043456   ;;  %vm407_vm2 = vmmov 1  }
   0x2   :  { %v19_v2 = vld [vmem:[%s565_s1] sm:$0xff]  ;;  %v350_v3 = vpack.c.bf16 %v36_v1, %v35_v0  ;;  %v20_v4 = vld [vmem:[%s565_s1 + $0x8] sm:$0xff]  ;;  %v38_v6 = vld [vmem:[%s565_s1 + $0x98] sm:$0xff]  ;;  %347 = vmatprep.mubr.msk.f32.mxu1 %vm405_vm0, %v406_v18  ;;  %v71_v25 = vshrl.u32 %v70_v16, 7  ;;  %vm100_vm4 = vcmask 359424   ;;  %v58_v16 = vstv %s566_s2 }
   0x3   :  { %v352_v8 = vpack.c.bf16 %v20_v4, %v19_v2  ;;  %v354_v9 = vpack.c.bf16 %v38_v6, %v37_v5  ;;  %v21_v10 = vld [vmem:[%s565_s1 + $0x10] sm:$0xff]  ;;  %v22_v11 = vld [vmem:[%s565_s1 + $0x18] sm:$0xff]  ;;  %v39_v12 = vld [vmem:[%s565_s1 + $0xa0] sm:$0xff]  ;;  %v69_v24 = vunpack.c.0.s8 %v68_v15  ;;  %vm249_vm5 = vcmask 7168  }
   0x4   :  { %351 = vmatprep.subr.bf16.mxu0 %v350_v3  ;;  %v40_v13 = vld [vmem:[%s565_s1 + $0xa8] sm:$0xff]  ;;  %v356_v17 = vpack.c.bf16 %v22_v11, %v21_v10  ;;  %v23_v20 = vld [vmem:[%s565_s1 + $0x20] sm:$0xff]  ;;  %v41_v22 = vld [vmem:[%s565_s1 + $0xb0] sm:$0xff] }
   0x5   :  { %353 = vmatpush3.bf16.msra.mxu0 %v352_v8  ;;  %v358_v19 = vpack.c.bf16 %v40_v13, %v39_v12  ;;  %v24_v21 = vld [vmem:[%s565_s1 + $0x28] sm:$0xff]  ;;  %v42_v23 = vld [vmem:[%s565_s1 + $0xb8] sm:$0xff]  ;;  %v25_v27 = vld [vmem:[%s565_s1 + $0x30] sm:$0xff]  ;;  %v72_v39 = vsub.s32 %v69_v24, %v71_v25 }
   0x6   :  { %355 = vmatprep.subr.bf16.mxu0 %v354_v9  ;;  %v360_v26 = vpack.c.bf16 %v24_v21, %v23_v20  ;;  %v362_v28 = vpack.c.bf16 %v42_v23, %v41_v22  ;;  %v26_v29 = vld [vmem:[%s565_s1 + $0x38] sm:$0xff]  ;;  %v51_v30 = vld [vmem:[%s565_s1 + $0x100] sm:$0xff]  ;;  %v52_v31 = vld [vmem:[%s565_s1 + $0x108] sm:$0xff] }
   0x7   :  { %v43_v32 = vld [vmem:[%s565_s1 + $0xc0] sm:$0xff]  ;;  %v44_v33 = vld [vmem:[%s565_s1 + $0xc8] sm:$0xff]  ;;  %v383_v35 = vpack.c.bf16 %v52_v31, %v51_v30  ;;  %v53_v37 = vld [vmem:[%s565_s1 + $0x110] sm:$0xff]  ;;  %v364_v40 = vpack.c.bf16 %v26_v29, %v25_v27 }
   0x8   :  { %v27_v34 = vld [vmem:[%s565_s1 + $0x40] sm:$0xff]  ;;  %v28_v36 = vld [vmem:[%s565_s1 + $0x48] sm:$0xff]  ;;  %v54_v38 = vld [vmem:[%s565_s1 + $0x118] sm:$0xff]  ;;  %v366_v44 = vpack.c.bf16 %v44_v33, %v43_v32 }
   0x9   :  { %357 = vmatpush3.bf16.msra.mxu0 %v356_v17  ;;  %v45_v41 = vld [vmem:[%s565_s1 + $0xd0] sm:$0xff]  ;;  %v46_v42 = vld [vmem:[%s565_s1 + $0xd8] sm:$0xff]  ;;  %384 = vmatpush3.bf16.msra.mxu1 %v383_v35  ;;  %v386_v43 = vpack.c.bf16 %v54_v38, %v53_v37  ;;  %v397_v45 = vld [vmem:[%s564_s0] ss:$6 sps:$4 sm:$0xff]   ;;  %v368_v49 = vpack.c.bf16 %v28_v36, %v27_v34 }
   0xa   :  { %359 = vmatprep.subr.bf16.mxu0 %v358_v19  ;;  %385 = vmatprep.subr.bf16.mxu1 %v403_v7  ;;  %v400_v46 = vld [vmem:[%s564_s0 + $0xc] ss:$6 sps:$4 sm:$0xff]   ;;  %v399_v47 = vld [vmem:[%s564_s0 + $0x4] ss:$6 sps:$4 sm:$0x33]   ;;  %v73_v50 = vrot.slane %v397_v45, %v72_v39  ;;  %v370_v57 = vpack.c.bf16 %v46_v42, %v45_v41  ;;  %v30_v59 = vld [vmem:[%s565_s1 + $0x58] sm:$0xff] }
   0xb   :  { %v402_v48 = vld [vmem:[%s564_s0 + $0x10] ss:$6 sps:$4 sm:$0x33]   ;;  %v87_v51 = vrot.slane %v400_v46, %v72_v39  ;;  %v55_v52 = vld [vmem:[%s565_s1 + $0x120] sm:$0xff]  ;;  %v56_v53 = vld [vmem:[%s565_s1 + $0x128] sm:$0xf]  ;;  %v80_v54 = vrot.slane %v399_v47, %v72_v39 }
   0xc   :  { %v94_v55 = vrot.slane %v402_v48, %v72_v39  ;;  %v389_v56 = vpack.c.bf16 %v56_v53, %v55_v52  ;;  %v29_v58 = vld [vmem:[%s565_s1 + $0x50] sm:$0xff]  ;;  %vm390_vm3 = vmpackc.low %vm103_vm1, %vm407_vm2  ;;  %v47_v61 = vld [vmem:[%s565_s1 + $0xe0] sm:$0xff] }
   0xd   :  { %361 = vmatpush3.bf16.msra.mxu0 %v360_v26  ;;  %387 = vmatpush3.bf16.msra.mxu1 %v386_v43  ;;  %v96_v60 = vcombine.high %v73_v50, %v87_v51  ;;  %v48_v62 = vld [vmem:[%s565_s1 + $0xe8] sm:$0xff]  ;;  %v372_v0 = vpack.c.bf16 %v30_v59, %v29_v58  ;;  %v31_v2 = vld [vmem:[%s565_s1 + $0x60] sm:$0xff]  ;;  %v49_v4 = vld [vmem:[%s565_s1 + $0xf0] sm:$0xff]  ;;  %v95_v11 = vcombine.low %v73_v50, %v87_v51 }
   0xe   :  { %363 = vmatprep.subr.bf16.mxu0 %v362_v28  ;;  %388 = vmatprep.subr.bf16.mxu1 %v403_v7  ;;  %v97_v63 = vcombine.low %v80_v54, %v94_v55  ;;  %v374_v1 = vpack.c.bf16 %v48_v62, %v47_v61  ;;  %v32_v3 = vld [vmem:[%s565_s1 + $0x68] sm:$0xff]  ;;  %v50_v5 = vld [vmem:[%s565_s1 + $0xf8] sm:$0xff]  ;;  %v33_v8 = vld [vmem:[%s565_s1 + $0x70] sm:$0xff] }
   0xf   :  { %171 = vmatprep.mubr.f32.mxu0 %v96_v60  ;;  %v376_v6 = vpack.c.bf16 %v32_v3, %v31_v2  ;;  %v378_v7 = vpack.c.bf16 %v50_v5, %v49_v4  ;;  %v34_v9 = vld [vmem:[%s565_s1 + $0x78] sm:$0xff] }
  0x10   :  { %v380_v10 = vpack.c.bf16 %v34_v9, %v33_v8 }
  0x11   :  { %365 = vmatpush3.bf16.msra.mxu0 %v364_v40  ;;  %391 = vmatpush3.bf16.msk.msra.mxu1 %vm390_vm3, %v389_v56 }
  0x12   :  { %367 = vmatprep.subr.bf16.mxu0 %v366_v44 }
  0x14   :  { %348 = vmatmul.mubr.msk.f32.vlgmr.msra.gmra.mrb[0].mxu1 %vm100_vm4, %v97_v63 }
  0x15   :  { %369 = vmatpush3.bf16.msra.mxu0 %v368_v49 }
  0x16   :  { %371 = vmatprep.subr.bf16.mxu0 %v370_v57 }
  0x19   :  { %373 = vmatpush3.bf16.msra.mxu0 %v372_v0 }
  0x1a   :  { %375 = vmatprep.subr.bf16.mxu0 %v374_v1 }
  0x1d   :  { %377 = vmatpush3.bf16.msra.mxu0 %v376_v6 }
  0x1e   :  { %379 = vmatprep.subr.bf16.mxu0 %v378_v7 }
  0x21   :  { %381 = vmatpush3.bf16.msra.mxu0 %v380_v10 }
  0x24   :  { %172 = vmatmul.mubr.f32.vlgmr.msra.gmra.mrb[0].mxu0 %v95_v11 }
  0xe7   :  { %v243_v12 = vpop.f32.mrb[0].mxu1 }
  0xe8   :  { %v349_v13 = vpop.f32.mrb[1].mxu1 }
  0xf7   :  { %v325_v14 = vpop.f32.mrb[0].mxu0 }
  0xf8   :  { %v326_v15 = vpop.f32.mrb[1].mxu0 }
  0xf9   :  { %v327_v17 = vadd.f32 %v326_v15, %v325_v14 }
  0xfb   :  { %v174_v18 = vadd.f32 %v327_v17, %v58_v16 }
  0xfd   :  { %v244_v19 = vadd.f32 %v243_v12, %v174_v18 }
  0xff   :  { %v292_v20 = vclamps-f32 %v244_v19, 1.0 }
 0x101   :  { %250 = vst.msk [vmem:[#allocation3] sm:$0xff] %vm249_vm5, %v292_v20 }
 0x108   :  { %v268_v21 = vld [vmem:[#allocation3] sm:$0x3] }
 0x109   :  { %269 = vst [vmem:[%s567_s3] sm:$0x3] %v268_v21 }

</bundles_post_ra>
